<compile_context>
chip_gen: v6e
topology: v6e:2x2x1
jax: 0.10.0
libtpu: 0.0.40
codegen_flags: <defaults>
</compile_context>

<pallas_src>
import functools

import jax
import jax.numpy as jnp
from jax import lax
from jax.experimental import pallas as pl
from jax.experimental.pallas import tpu as pltpu


# ----------------------------------------------------------------------------- helpers

def _pick_tile(dim, target, align):
    """Largest tile <= target that divides `dim` and is a multiple of `align`,
    else the full extent (full-extent blocks always satisfy the (8,128) rule)."""
    if dim <= target:
        return dim
    t = (target // align) * align
    while t >= align:
        if dim % t == 0:
            return t
        t -= align
    # No aligned divisor (e.g. Nq=197): fall back to the full extent.  The VMEM
    # budgeting below makes oversized blocks visible instead of silently OOM-ing.
    return dim


def _sublane_align(dtype):
    # 8 rows per vreg for 4-byte, 16 for 2-byte (bf16), 32 for 1-byte dtypes.
    return max(8, 32 // jnp.dtype(dtype).itemsize)


@functools.lru_cache(maxsize=None)
def _vmem_limit_bytes():
    """Per-generation VMEM limit: ~3/4 of physical capacity, capped at 96 MiB.
    128 MiB parts (v5e/v6e) -> 96 MiB; 64 MiB-per-TC parts (v7x) -> 48 MiB."""
    try:
        cap = int(pltpu.get_tpu_info().vmem_capacity_bytes)
        return max(16 * 1024 * 1024, min(cap * 3 // 4, 96 * 1024 * 1024))
    except Exception:
        return 32 * 1024 * 1024  # conservative fallback


# ----------------------------------------------------------------------------- linear (tiled)

def _linear_fullk_kernel(x_ref, w_ref, b_ref, o_ref):
    # x: (tm, K), w: (tn, K) [PyTorch (out, in) layout], b: (1, tn) -> o: (tm, tn).
    # Full-K contraction in one shot: no accumulator scratch, no init/finalize phases.
    acc = lax.dot_general(
        x_ref[...], w_ref[...],
        dimension_numbers=(((1,), (1,)), ((), ())),   # contract last dims: x @ w.T
        preferred_element_type=jnp.float32)
    o_ref[...] = (acc + b_ref[...].astype(jnp.float32)).astype(o_ref.dtype)


def _linear_ktiled_kernel(x_ref, w_ref, b_ref, o_ref, acc_ref):
    # Large-K fallback: K reduction as innermost 'arbitrary' grid axis, f32 VMEM acc.
    @pl.when(pl.program_id(2) == 0)
    def _():
        acc_ref[...] = jnp.zeros_like(acc_ref)

    acc_ref[...] += lax.dot_general(
        x_ref[...], w_ref[...],
        dimension_numbers=(((1,), (1,)), ((), ())),
        preferred_element_type=jnp.float32)

    @pl.when(pl.program_id(2) == pl.num_programs(2) - 1)
    def _():
        o_ref[...] = (acc_ref[...] + b_ref[...].astype(jnp.float32)).astype(o_ref.dtype)


def _linear(x2d, w, b, *, tm_target=512, tn_target=256, tk_target=512, full_k_max=2048):
    """x2d: (M, K), w: (N, K) (PyTorch layout), b: (N,) -> (M, N) in x2d.dtype."""
    M, K = x2d.shape
    N = w.shape[0]
    tm = _pick_tile(M, tm_target, _sublane_align(x2d.dtype))
    tn = _pick_tile(N, tn_target, 128)
    b2d = b.reshape(1, N)
    vmem_limit = _vmem_limit_bytes()
    isz = x2d.dtype.itemsize
    cost = pl.CostEstimate(
        flops=2 * M * N * K,
        transcendentals=0,
        bytes_accessed=(M * K + N * K + M * N) * isz + N * b.dtype.itemsize)

    if K <= full_k_max:
        # ViT-sized K fits in VMEM: 2-D grid, no reduction axis, no acc scratch.
        return pl.pallas_call(
            _linear_fullk_kernel,
            out_shape=jax.ShapeDtypeStruct((M, N), x2d.dtype),
            grid=(M // tm, N // tn),
            in_specs=[
                pl.BlockSpec((tm, K), lambda i, j: (i, 0)),
                pl.BlockSpec((tn, K), lambda i, j: (j, 0)),
                pl.BlockSpec((1, tn), lambda i, j: (0, j)),
            ],
            out_specs=pl.BlockSpec((tm, tn), lambda i, j: (i, j)),
            compiler_params=pltpu.CompilerParams(
                dimension_semantics=("parallel", "parallel"),
                vmem_limit_bytes=vmem_limit),
            cost_estimate=cost,
        )(x2d, w, b2d)

    tk = _pick_tile(K, tk_target, 128)
    return pl.pallas_call(
        _linear_ktiled_kernel,
        out_shape=jax.ShapeDtypeStruct((M, N), x2d.dtype),
        grid=(M // tm, N // tn, K // tk),
        in_specs=[
            pl.BlockSpec((tm, tk), lambda i, j, k: (i, k)),
            pl.BlockSpec((tn, tk), lambda i, j, k: (j, k)),
            pl.BlockSpec((1, tn), lambda i, j, k: (0, j)),
        ],
        out_specs=pl.BlockSpec((tm, tn), lambda i, j, k: (i, j)),
        scratch_shapes=[pltpu.VMEM((tm, tn), jnp.float32)],
        compiler_params=pltpu.CompilerParams(
            dimension_semantics=("parallel", "parallel", "arbitrary"),
            vmem_limit_bytes=vmem_limit),
        cost_estimate=cost,
    )(x2d, w, b2d)


# ----------------------------------------------------------------------------- attention kernel

def _make_attn_kernel(scale, num_heads, head_dim, need_attn, exp_dtype):
    C = num_heads * head_dim

    def kernel(q_ref, kv_ref, *out_refs):
        # q_ref:  (1, tq, C)    -- q projection for one (batch, Nq-tile)
        # kv_ref: (1, Nkv, 2C)  -- kv projection for the same batch element
        #                          (VMEM-resident across Nq tiles of that batch)
        if need_attn:
            attn_ref, x_ref = out_refs
        else:
            (x_ref,) = out_refs

        # Static per-head loop with immediate per-head stores: each head's values are
        # consumed by their own store, so at most one head's (tq, Nkv) + (tq, D)
        # tensors are live at a time, and there is no concat relayout at the end.
        for h in range(num_heads):
            lo, hi = h * head_dim, (h + 1) * head_dim
            # Fold the softmax scale into the small (tq, D) q slice.
            qh = q_ref[0, :, lo:hi] * scale
            kh = kv_ref[0, :, lo:hi]
            vh = kv_ref[0, :, C + lo:C + hi]
            # scores: contract last dims (q @ k^T) -- no in-kernel transpose of k.
            s = lax.dot_general(
                qh, kh, dimension_numbers=(((1,), (1,)), ((), ())),
                preferred_element_type=jnp.float32)
            s = s - jnp.max(s, axis=-1, keepdims=True)
            # exp in bf16 for bf16 models (EUP bf16 ~2x rate on v6e/v7x), f32 otherwise.
            p = jnp.exp(s.astype(exp_dtype))
            denom = jnp.sum(p.astype(jnp.float32), axis=-1, keepdims=True)
            inv = pl.reciprocal(denom, approx=False)      # exact softmax numerics
            if need_attn:
                pn = p.astype(jnp.float32) * inv
                attn_ref[0, h] = pn.astype(attn_ref.dtype)
                o = jnp.dot(pn.astype(vh.dtype), vh,
                            preferred_element_type=jnp.float32)
            else:
                # Normalize after the matmul: tq*D multiplies instead of tq*Nkv.
                o = jnp.dot(p.astype(vh.dtype), vh,
                            preferred_element_type=jnp.float32) * inv
            # Store this head's slice straight into the merged-head (tq, C) slab.
            x_ref[0, :, lo:hi] = o.astype(x_ref.dtype)

    return kernel


def _attn_tq(Nq, Nkv, C, H, x_dtype, attn_dtype, need_attn, vmem_limit):
    """Pick the largest Nq tile whose double-buffered working set fits the budget."""
    x_isz = jnp.dtype(x_dtype).itemsize
    attn_isz = jnp.dtype(attn_dtype).itemsize
    sub = _sublane_align(x_dtype)
    tq = Nq
    for target in (512, 256, 128, 64, 32, 16, 8):
        tq = _pick_tile(Nq, target, sub)
        resident = 2 * (tq * C * x_isz                # q block (double-buffered)
                        + Nkv * 2 * C * x_isz         # kv block
                        + tq * C * x_isz              # x output block
                        + (H * tq * Nkv * attn_isz if need_attn else 0))
        if resident <= int(vmem_limit * 0.8):
            return tq
    # TODO(synk): if even tq=8 does not fit (very long Nkv), stream KV flash-style over an extra grid axis.
    return tq


# ----------------------------------------------------------------------------- cross attention

def cross_attention(query, key_value, params, num_heads, *,
                    need_attn=True, attn_dtype=None):
    """Returns (x, attn) like the PyTorch module (attn is None if need_attn=False).

    attn defaults to the softmax compute dtype (float32), matching PyTorch; pass
    attn_dtype=jnp.bfloat16 to halve attn writeback HBM traffic if acceptable.
    """
    B, Nq, C = query.shape
    _, Nkv, Ckv = key_value.shape
    assert Ckv == C and C % num_heads == 0
    H = num_heads
    D = C // H
    scale = D ** (-0.5)
    x_dtype = query.dtype
    attn_dtype = jnp.float32 if attn_dtype is None else jnp.dtype(attn_dtype)
    exp_dtype = (jnp.bfloat16 if jnp.dtype(x_dtype) == jnp.dtype(jnp.bfloat16)
                 else jnp.float32)
    vmem_limit = _vmem_limit_bytes()

    # --- q / kv projections (tiled Pallas matmuls, PyTorch (out, in) weight layout) ---
    q = _linear(query.reshape(B * Nq, C), params["wq"], params["bq"]).reshape(B, Nq, C)
    kv = _linear(key_value.reshape(B * Nkv, C), params["wkv"], params["bkv"]
                 ).reshape(B, Nkv, 2 * C)

    # --- fused per-batch attention: all heads of one (batch, Nq-tile) per grid step,
    #     reading q/kv straight from the projection outputs (no head-split/merge HBM
    #     transposes) and writing a lane-dense merged-head (tq, C) slab. ---
    tq = _attn_tq(Nq, Nkv, C, H, x_dtype, attn_dtype, need_attn, vmem_limit)

    x_isz = jnp.dtype(x_dtype).itemsize
    cost = pl.CostEstimate(
        flops=4 * B * H * Nq * Nkv * D,
        transcendentals=B * H * Nq * Nkv,
        bytes_accessed=(B * Nq * C + B * Nkv * 2 * C + B * Nq * C) * x_isz
        + (B * H * Nq * Nkv * jnp.dtype(attn_dtype).itemsize if need_attn else 0))

    in_specs = [
        pl.BlockSpec((1, tq, C), lambda b, i: (b, i, 0)),
        # kv block index is independent of the Nq-tile axis -> stays VMEM resident
        # across all Nq tiles of a batch element.
        # TODO(synk): pipeline_mode=pl.Buffered(1) here would halve the kv footprint since its index only changes with b.
        pl.BlockSpec((1, Nkv, 2 * C), lambda b, i: (b, 0, 0)),
    ]
    x_spec = pl.BlockSpec((1, tq, C), lambda b, i: (b, i, 0))
    x_struct = jax.ShapeDtypeStruct((B, Nq, C), x_dtype)
    if need_attn:
        out_specs = (pl.BlockSpec((1, H, tq, Nkv), lambda b, i: (b, 0, i, 0)), x_spec)
        out_shape = (jax.ShapeDtypeStruct((B, H, Nq, Nkv), attn_dtype), x_struct)
    else:
        out_specs = x_spec
        out_shape = x_struct

    res = pl.pallas_call(
        _make_attn_kernel(scale, H, D, need_attn, exp_dtype),
        grid=(B, Nq // tq),
        in_specs=in_specs,
        out_specs=out_specs,
        out_shape=out_shape,
        compiler_params=pltpu.CompilerParams(
            # Both grid axes are independent -> megacore-shardable on v7x (2 TCs/chip);
            # per-TC VMEM budgeting is handled by _attn_tq above.
            dimension_semantics=("parallel", "parallel"),
            vmem_limit_bytes=vmem_limit),
        cost_estimate=cost,
    )(q, kv)

    if need_attn:
        attn, x = res
    else:
        x, attn = res, None

    # --- output projection (tiled Pallas matmul, with bias) ---
    x = _linear(x.reshape(B * Nq, C), params["wproj"], params["bproj"]).reshape(B, Nq, C)

    # attn_drop / proj_drop are identity at p=0.0 (eval mode), so nothing to do.
    return x, attn


# ----------------------------------------------------------------------------- reference (pure JAX)

def cross_attention_ref(query, key_value, params, num_heads):
    B, Nq, C = query.shape
    _, Nkv, _ = key_value.shape
    H = num_heads
    D = C // H
    scale = D ** (-0.5)
    q = query @ params["wq"].T
    kv = key_value @ params["wkv"].T
    q = q.reshape(B, Nq, H, D).transpose(0, 2, 1, 3)
    kv = kv.reshape(B, Nkv, 2, H, D)
    k = kv[:, :, 0].transpose(0, 2, 1, 3)
    v = kv[:, :, 1].transpose(0, 2, 1, 3)
    attn = jax.nn.softmax((q @ jnp.swapaxes(k, -2, -1)) * scale, axis=-1)
    x = (attn @ v).transpose(0, 2, 1, 3).reshape(B, Nq, C)
    x = x @ params["wproj"].T + params["bproj"]
    return x, attn


# ----------------------------------------------------------------------------- main

if __name__ == "__main__":
    B, Nq, Nkv, C, H = 2, 8, 16, 32, 8

    key = jax.random.PRNGKey(0)
    k1, k2, k3, k4, k5, k6 = jax.random.split(key, 6)

    # deterministic synthetic parameters (PyTorch Linear weight shape: (out, in))
    params = {
        "wq":    jax.random.normal(k1, (C, C), jnp.float32) * 0.05,
        "bq":    jnp.zeros((C,), jnp.float32),          # qkv_bias=False
        "wkv":   jax.random.normal(k2, (2 * C, C), jnp.float32) * 0.05,
        "bkv":   jnp.zeros((2 * C,), jnp.float32),      # qkv_bias=False
        "wproj": jax.random.normal(k3, (C, C), jnp.float32) * 0.05,
        "bproj": jax.random.normal(k4, (C,), jnp.float32) * 0.05,
    }

    query = jax.random.normal(k5, (B, Nq, C), jnp.float32)
    key_value = jax.random.normal(k6, (B, Nkv, C), jnp.float32)

    x, attn = cross_attention(query, key_value, params, num_heads=H)
    jax.block_until_ready(x)
    jax.block_until_ready(attn)

    x_exp, attn_exp = cross_attention_ref(query, key_value, params, num_heads=H)
    assert x.shape == (B, Nq, C) and attn.shape == (B, H, Nq, Nkv)
    assert attn.dtype == jnp.float32            # softmax compute dtype, like PyTorch
    # exact-reciprocal softmax -> tight tolerance is fine
    assert jnp.allclose(x, x_exp, atol=1e-4, rtol=1e-4)
    assert jnp.allclose(attn, attn_exp, atol=1e-4, rtol=1e-4)

    print("KERNEL_OK")
</pallas_src>

<mosaic_0001>
module attributes {stable_mosaic.version = 11 : i64} {
  func.func @_linear_fullk_kernel(%arg0: i32, %arg1: i32, %arg2: memref<16x32xf32, #tpu.memory_space<vmem>>, %arg3: memref<32x32xf32, #tpu.memory_space<vmem>>, %arg4: memref<1x32xf32, #tpu.memory_space<vmem>>, %arg5: memref<16x32xf32, #tpu.memory_space<vmem>>) attributes {dimension_semantics = [#tpu.dimension_semantics<parallel>, #tpu.dimension_semantics<parallel>], iteration_bounds = array<i64: 1, 1>, scalar_prefetch = 0 : i64, scratch_operands = 0 : i64, tpu.core_type = #tpu.core_type<tc>, window_params = [{transform_indices = @transform_0, window_bounds = array<i64: 16, 32>}, {transform_indices = @transform_1, window_bounds = array<i64: 32, 32>}, {transform_indices = @transform_2, window_bounds = array<i64: 1, 32>}, {transform_indices = @transform_3, window_bounds = array<i64: 16, 32>}]} {
    %c0 = arith.constant 0 : index
    %c0_0 = arith.constant 0 : index
    %0 = vector.load %arg2[%c0, %c0_0] : memref<16x32xf32, #tpu.memory_space<vmem>>, vector<16x32xf32>
    %c0_1 = arith.constant 0 : index
    %c0_2 = arith.constant 0 : index
    %1 = vector.load %arg3[%c0_1, %c0_2] : memref<32x32xf32, #tpu.memory_space<vmem>>, vector<32x32xf32>
    %cst = arith.constant dense<0.000000e+00> : vector<16x32xf32>
    %2 = tpu.matmul %0, %1, %cst {dimension_numbers = #tpu.dot_dimension_numbers<[1], [1], [0], [0], [0, 0, 1, 0], [], []>} : vector<16x32xf32>, vector<32x32xf32>, vector<16x32xf32> -> vector<16x32xf32>
    %c0_3 = arith.constant 0 : index
    %c0_4 = arith.constant 0 : index
    %3 = vector.load %arg4[%c0_3, %c0_4] : memref<1x32xf32, #tpu.memory_space<vmem>>, vector<1x32xf32>
    %4 = vector.broadcast %3 : vector<1x32xf32> to vector<16x32xf32>
    %5 = arith.addf %2, %4 : vector<16x32xf32>
    %c0_5 = arith.constant 0 : index
    %c0_6 = arith.constant 0 : index
    %6 = vector.load %arg5[%c0_5, %c0_6] : memref<16x32xf32, #tpu.memory_space<vmem>>, vector<16x32xf32>
    tpu.vector_store %arg5[%c0_5, %c0_6], %5 {strides = array<i32>} : memref<16x32xf32, #tpu.memory_space<vmem>>, vector<16x32xf32>,
    return
  }
  func.func @transform_0(%arg0: i32, %arg1: i32) -> (i32, i32) {
    %c0_i32 = arith.constant 0 : i32
    %c0_i32_0 = arith.constant 0 : i32
    return %arg0, %c0_i32 : i32, i32
  }
  func.func @transform_1(%arg0: i32, %arg1: i32) -> (i32, i32) {
    %c0_i32 = arith.constant 0 : i32
    %c0_i32_0 = arith.constant 0 : i32
    return %arg1, %c0_i32 : i32, i32
  }
  func.func @transform_2(%arg0: i32, %arg1: i32) -> (i32, i32) {
    %c0_i32 = arith.constant 0 : i32
    %c0_i32_0 = arith.constant 0 : i32
    return %c0_i32, %arg1 : i32, i32
  }
  func.func @transform_3(%arg0: i32, %arg1: i32) -> (i32, i32) {
    %c0_i32 = arith.constant 0 : i32
    return %arg0, %arg1 : i32, i32
  }
}

</mosaic_0001>

<bundles_post_ra>
// kernel: tpu_custom_call.1
= control target key start
LH: loop header
LB: loop body
LE: loop exit
PB: predicated region body
PF: predicated region fallthrough
CT: control target
= control target key end

     0   :  { %8 = vsyncpa [#allocation3], 0  ;;  %s323_s0 = inlined_call_operand.hbm [shape: f32[16,32], index: 0, kind: input, shape index: {}]   ;;  %s324_s1 = inlined_call_operand.hbm [shape: f32[32,32], index: 1, kind: input, shape index: {}]   ;;  %s325_s2 = inlined_call_operand.vmem [shape: f32[1,32], index: 2, kind: input, shape index: {}]   ;;  %s326_s3 = inlined_call_operand.hbm [shape: f32[16,32], index: 3, kind: output, shape index: {}]  }
   0x1   :  { %9 = vsyncpa [#allocation6], 0 }
   0x2   :  { %10 = vsyncpa [#allocation4], 0  ;;  %s265_s12 = smov [#allocation2]  }
   0x3   :  { %s16_s13 = sshll.u32 %s265_s12, 4  ;;  %s17_s13 = int_to_ptr.vmem [resolvable:$true] %s16_s13 }
   0x4   :  { %s207_s14 = scalar_lea.vmem %s17_s13, 256  ;;  %p212_p1 = scmp.lt.s32.totalorder %s17_s13, %s17_s13 }
   0x5   :  { %p208_p0 = scmp.ne.s32.totalorder %s17_s13, %s207_s14  ;;  %p213_p2 = scmp.lt.s32.totalorder %s207_s14, %s207_s14 }
   0x7   :  { %p214_p3 = por %p213_p2, %p212_p1 }
   0x9   :  { %p215_p4 = pnand %p214_p3, %p208_p0 }
   0xb   :  { %218 = shalt.err (!%p215_p4)
}
   0xc   :  { %s266_s15 = smov 128   ;;  %s267_s16 = smov 8  }
   0xd   :  { %22 = dma.hbm_to_vmem [thread:$0]  %s323_s0, 256, %s17_s13, [#allocation3], %s266_s15, %s266_s15, %s267_s16  }
   0xe   :  { %s268_s19 = smov [#allocation5]  }
   0xf   :  { %s28_s20 = sshll.u32 %s268_s19, 4  ;;  %s29_s20 = int_to_ptr.vmem [resolvable:$true] %s28_s20 }
  0x10   :  { %s227_s21 = scalar_lea.vmem %s29_s20, 512  ;;  %p232_p6 = scmp.lt.s32.totalorder %s29_s20, %s29_s20 }
  0x11   :  { %p228_p5 = scmp.ne.s32.totalorder %s29_s20, %s227_s21  ;;  %p233_p7 = scmp.lt.s32.totalorder %s227_s21, %s227_s21 }
  0x13   :  { %p234_p8 = por %p233_p7, %p232_p6 }
  0x15   :  { %p235_p9 = pnand %p234_p8, %p228_p5 }
  0x17   :  { %238 = shalt.err (!%p235_p9)
}
  0x18   :  { %34 = dma.hbm_to_vmem [thread:$0]  %s324_s1, 512, %s29_s20, [#allocation6], %s266_s15, %s266_s15, %s267_s16  }
  0x19   :  { %259 = dma.done.wait [#allocation3], 256  }
  0x1a   :  { %260 = vsyncadd [#allocation3], 4294967040 }
  0x1b   :  { %261 = dma.done.wait [#allocation6], 512  }
  0x1c   :  { %262 = vsyncadd [#allocation6], 4294966784  ;;  %vm56_vm0 = vcmask 261120   ;;  %v48_v0 = vld [vmem:[#allocation5 + $0x18] sm:$0xff]  ;;  %v47_v1 = vld [vmem:[#allocation5 + $0x10] sm:$0xff]  ;;  %s269_s24 = smov [#allocation7]  }
  0x1d   :  { %183 = vmatprep.subr.msk.mxu0 %vm56_vm0, %v48_v0  ;;  %v43_v2 = vld [vmem:[#allocation2] sm:$0xff]  ;;  %v46_v3 = vld [vmem:[#allocation5 + $0x8] sm:$0xff]  ;;  %v45_v4 = vld [vmem:[#allocation5] sm:$0xff]  ;;  %s157_s25 = sshll.u32 %s269_s24, 4  ;;  %s158_s25 = int_to_ptr.vmem [resolvable:$true] %s157_s25 }
  0x1e   :  { %184 = vmatpush3.xpose.msk.msra.mxu0 %vm56_vm0, %v48_v0  ;;  %191 = vmatprep.mubr.msk.f32.mxu0 %vm56_vm0, %v43_v2  ;;  %v44_v5 = vld [vmem:[#allocation2 + $0x8] sm:$0xff]  ;;  %v170_v6 = vld [vmem:[%s325_s2] ss:$0 sm:$0xff]  ;;  %s239_s26 = scalar_lea.vmem %s158_s25, 256  ;;  %p244_p11 = scmp.lt.s32.totalorder %s158_s25, %s158_s25 }
  0x1f   :  { %185 = vmatprep.subr.msk.mxu0 %vm56_vm0, %v47_v1  ;;  %p240_p10 = scmp.ne.s32.totalorder %s158_s25, %s239_s26  ;;  %p245_p12 = scmp.lt.s32.totalorder %s239_s26, %s239_s26 }
  0x21   :  { %p246_p13 = por %p245_p12, %p244_p11 }
  0x22   :  { %186 = vmatpush3.xpose.msk.msra.mxu0 %vm56_vm0, %v47_v1 }
  0x23   :  { %187 = vmatprep.subr.msk.mxu0 %vm56_vm0, %v46_v3  ;;  %p247_p0 = pnand %p246_p13, %p240_p10 }
  0x26   :  { %188 = vmatpush3.xpose.msk.msra.mxu0 %vm56_vm0, %v46_v3 }
  0x27   :  { %189 = vmatprep.subr.msk.mxu0 %vm56_vm0, %v45_v4 }
  0x2a   :  { %190 = vmatpush3.xpose.msk.msra.mxu0 %vm56_vm0, %v45_v4 }
  0x2d   :  { %192 = vmatmul.mubr.msk.f32.vlgmr.msra.gmra.mxu0 %vm56_vm0, %v44_v5 }
  0xed   :  { %v193_v7 = vpop.f32.mrf.mxu0 }
  0xee   :  { %v147_v8 = vadd.f32 %v193_v7, %v170_v6 }
  0xef   :  { %v141_v9 = vpop.f32.mrf.mxu0 }
  0xf0   :  { %151 = vst.msk [vmem:[#allocation7 + $0x8] sm:$0xff] %vm56_vm0, %v147_v8  ;;  %v142_v10 = vadd.f32 %v170_v6, %v141_v9 }
  0xf2   :  { %150 = vst.msk [vmem:[#allocation7] sm:$0xff] %vm56_vm0, %v142_v10 }
  0xf3   :  { %250 = shalt.err (!%p247_p0)
}
  0xf4   :  { %163 = dma.vmem_to_hbm [thread:$0]  %s158_s25, 256, %s326_s3, [#allocation4], %s266_s15, %s266_s15, %s267_s16  }
  0xf5   :  { %263 = dma.done.wait [#allocation4], 256  }
  0xf6   :  { %264 = vsyncadd [#allocation4], 4294967040 }
  0xf7   :  { %167 = vsyncpa [#allocation3], 1 }
  0xf8   :  { %168 = vsyncpa [#allocation6], 1 }
  0xf9   :  { %169 = vsyncpa [#allocation4], 1 }

</bundles_post_ra>
